<compile_context>
chip_gen: v7x
topology: tpu7x:2x2x1
jax: 0.10.0
libtpu: 0.0.40
codegen_flags: <defaults>
</compile_context>

<pallas_src>
import jax
import jax.numpy as jnp
from jax.experimental import pallas as pl
from jax.experimental.pallas import tpu as pltpu

IN_DIM = 16                     # in_dim
OUT_DIM = 8                     # out_dim
HIDDEN = 64                     # fixed hidden size of kernel_generator
KDIM = OUT_DIM * IN_DIM         # 128 = out_dim * in_dim
FUSED = KDIM + HIDDEN           # 192 = [R | W1] fused output width
DEFAULT_TB = 2048               # batch tile (rows per grid step)


def _round_up(a, b):
    return (a + b - 1) // b * b


def dynamic_conv_kernel(x_ref, wf_ref, b1_ref, w2_ref, b2_ref, g_ref, o_ref):
    # x_ref : (TB, 16)  f32
    # wf_ref: (16, 192) bf16   fused [R | W1]
    # b1_ref: (1, 64)   f32
    # w2_ref: (64, 128) bf16
    # b2_ref: (1, 128)  f32
    # g_ref : (128, 8)  bf16   0/1 group-sum matrix (exact in bf16)
    # o_ref : (TB, 8)   f32
    xb = x_ref[...].astype(jnp.bfloat16)

    # Fused GEMM: columns [0,128) replicate x (via 0/1 R), columns [128,192) are
    # the first generator layer.  bf16 MXU inputs, f32 accumulation.
    tmp = jnp.dot(xb, wf_ref[...], preferred_element_type=jnp.float32)   # (TB, 192)
    x_rep = tmp[:, :KDIM]                                                # (TB, 128)
    h = jnp.maximum(tmp[:, KDIM:] + b1_ref[...], 0.0)                    # (TB, 64)

    # Second generator layer: Linear(64 -> 128).
    k = jnp.dot(h.astype(jnp.bfloat16), w2_ref[...],
                preferred_element_type=jnp.float32) + b2_ref[...]        # (TB, 128)

    # bmm tail: y[n, o] = sum_i k[n, o*16 + i] * x[n, i]
    p = k * x_rep                                                        # f32 VPU
    # hi/lo split keeps the 16-term group sums ~f32 accurate on the bf16 MXU path.
    p_hi = p.astype(jnp.bfloat16)
    p_lo = (p - p_hi.astype(jnp.float32)).astype(jnp.bfloat16)
    y = (jnp.dot(p_hi, g_ref[...], preferred_element_type=jnp.float32) +
         jnp.dot(p_lo, g_ref[...], preferred_element_type=jnp.float32))  # (TB, 8)

    o_ref[...] = y.astype(o_ref.dtype)


def dynamic_conv(x, w1, b1, w2, b2, *, tb=DEFAULT_TB):
    n, in_dim = x.shape
    assert in_dim == IN_DIM
    assert w1.shape == (IN_DIM, HIDDEN)
    assert w2.shape == (HIDDEN, KDIM)
    b1 = b1.reshape(1, HIDDEN).astype(jnp.float32)
    b2 = b2.reshape(1, KDIM).astype(jnp.float32)

    # Constant 0/1 matrices (column c = o*IN_DIM + i):
    #   R[i, c] = 1 iff c % IN_DIM == i       (replicate x OUT_DIM times)
    #   G[c, o] = 1 iff c // IN_DIM == o      (sum each 16-lane group)
    c = jnp.arange(KDIM, dtype=jnp.int32)
    r_mat = (c[None, :] % IN_DIM ==
             jnp.arange(IN_DIM, dtype=jnp.int32)[:, None]).astype(jnp.bfloat16)   # (16, 128)
    g_mat = (c[:, None] // IN_DIM ==
             jnp.arange(OUT_DIM, dtype=jnp.int32)[None, :]).astype(jnp.bfloat16)  # (128, 8)

    # Fused bf16 weight [R | W1] so x replication rides the first GEMM for free
    # on the 256-wide MXU (both in-kernel slices start on a 128-lane boundary).
    wf = jnp.concatenate([r_mat, w1.astype(jnp.bfloat16)], axis=-1)               # (16, 192)
    w2b = w2.astype(jnp.bfloat16)

    # Tile clamp: sublane-aligned, no larger than needed, and keep >= 8 grid
    # steps so both v7x TensorCores get work on the parallel axis.
    tb = min(tb, _round_up(pl.cdiv(n, 8), 8))
    tb = max(8, _round_up(tb, 8))
    grid = (pl.cdiv(n, tb),)

    cost = pl.CostEstimate(
        flops=n * (2 * (IN_DIM * FUSED + HIDDEN * KDIM + 2 * KDIM * OUT_DIM) + 2 * KDIM),
        transcendentals=0,
        bytes_accessed=n * (IN_DIM * 4 + OUT_DIM * 4),
    )

    return pl.pallas_call(
        dynamic_conv_kernel,
        out_shape=jax.ShapeDtypeStruct((n, OUT_DIM), jnp.float32),
        grid_spec=pltpu.PrefetchScalarGridSpec(
            num_scalar_prefetch=0,
            grid=grid,
            in_specs=[
                pl.BlockSpec((tb, IN_DIM), lambda i: (i, 0)),        # x tile (streamed)
                pl.BlockSpec((IN_DIM, FUSED), lambda i: (0, 0)),     # [R|W1] (resident)
                pl.BlockSpec((1, HIDDEN), lambda i: (0, 0)),         # b1 (resident)
                pl.BlockSpec((HIDDEN, KDIM), lambda i: (0, 0)),      # W2 (resident)
                pl.BlockSpec((1, KDIM), lambda i: (0, 0)),           # b2 (resident)
                pl.BlockSpec((KDIM, OUT_DIM), lambda i: (0, 0)),     # G  (resident)
            ],
            out_specs=pl.BlockSpec((tb, OUT_DIM), lambda i: (i, 0)),
        ),
        compiler_params=pltpu.CompilerParams(
            dimension_semantics=("parallel",),
            vmem_limit_bytes=32 * 1024 * 1024),
        cost_estimate=cost,
    )(x, wf, b1, w2b, b2, g_mat)


def reference_f32(x, w1, b1, w2, b2):
    """Pure f32 reference (matches the PyTorch module exactly)."""
    h = jnp.maximum(x @ w1 + b1, 0.0)
    k = (h @ w2 + b2).reshape(x.shape[0], OUT_DIM, IN_DIM)
    return jnp.einsum("noi,ni->no", k, x)


def reference_mixed(x, w1, b1, w2, b2):
    """Reference mirroring the kernel's precision (bf16 MXU inputs, f32 accumulate)."""
    xb = x.astype(jnp.bfloat16)
    h = jnp.dot(xb, w1.astype(jnp.bfloat16), preferred_element_type=jnp.float32) + b1
    h = jnp.maximum(h, 0.0)
    k = jnp.dot(h.astype(jnp.bfloat16), w2.astype(jnp.bfloat16),
                preferred_element_type=jnp.float32) + b2
    k = k.reshape(x.shape[0], OUT_DIM, IN_DIM)
    # Kernel's x_rep comes from the bf16 fused GEMM, so the bmm product uses bf16(x).
    return jnp.einsum("noi,ni->no", k, xb.astype(jnp.float32))


if __name__ == "__main__":
    key = jax.random.PRNGKey(0)
    kx, k1, kb1, k2, kb2 = jax.random.split(key, 5)

    # Small demo: 2048 "points" of 16 features.  The tb clamp yields tb=256 and
    # an 8-step parallel grid (feeds both v7x TensorCores; trivially fine on
    # single-TC v5e/v6e).
    N = 2048
    x = jax.random.normal(kx, (N, IN_DIM), dtype=jnp.float32)

    # Synthetic parameters: nn.Linear(16, 64) and nn.Linear(64, out_dim*in_dim),
    # stored transposed as (in, out).
    w1 = jax.random.normal(k1, (IN_DIM, HIDDEN), dtype=jnp.float32) * 0.1
    b1 = jax.random.normal(kb1, (1, HIDDEN), dtype=jnp.float32) * 0.1
    w2 = jax.random.normal(k2, (HIDDEN, KDIM), dtype=jnp.float32) * 0.1
    b2 = jax.random.normal(kb2, (1, KDIM), dtype=jnp.float32) * 0.1

    y = jax.block_until_ready(dynamic_conv(x, w1, b1, w2, b2))
    assert y.shape == (N, OUT_DIM)

    # Tight check against a reference using the same bf16-on-MXU precision.
    y_mixed = reference_mixed(x, w1, b1, w2, b2)
    assert jnp.allclose(y, y_mixed, atol=1e-2, rtol=1e-2), \
        float(jnp.max(jnp.abs(y - y_mixed)))

    # Loose sanity check against the full-f32 reference (bf16 matmul inputs
    # intentionally loosen this tolerance).
    y_f32 = reference_f32(x, w1, b1, w2, b2)
    assert jnp.allclose(y, y_f32, atol=0.25, rtol=0.1), \
        float(jnp.max(jnp.abs(y - y_f32)))

    print("KERNEL_OK")
</pallas_src>

<mosaic_0001>
module attributes {stable_mosaic.version = 11 : i64} {
  func.func @dynamic_conv_kernel(%arg0: i32, %arg1: memref<256x16xf32, #tpu.memory_space<vmem>>, %arg2: memref<16x192xbf16, #tpu.memory_space<vmem>>, %arg3: memref<1x64xf32, #tpu.memory_space<vmem>>, %arg4: memref<64x128xbf16, #tpu.memory_space<vmem>>, %arg5: memref<1x128xf32, #tpu.memory_space<vmem>>, %arg6: memref<128x8xbf16, #tpu.memory_space<vmem>>, %arg7: memref<256x8xf32, #tpu.memory_space<vmem>>) attributes {dimension_semantics = [#tpu.dimension_semantics<parallel>], iteration_bounds = array<i64: 8>, scalar_prefetch = 0 : i64, scratch_operands = 0 : i64, tpu.core_type = #tpu.core_type<tc>, window_params = [{transform_indices = @transform_0, window_bounds = array<i64: 256, 16>}, {pipeline_mode = #tpu.pipeline_mode<synchronous>, transform_indices = @transform_1, window_bounds = array<i64: 16, 192>}, {pipeline_mode = #tpu.pipeline_mode<synchronous>, transform_indices = @transform_2, window_bounds = array<i64: 1, 64>}, {pipeline_mode = #tpu.pipeline_mode<synchronous>, transform_indices = @transform_3, window_bounds = array<i64: 64, 128>}, {pipeline_mode = #tpu.pipeline_mode<synchronous>, transform_indices = @transform_4, window_bounds = array<i64: 1, 128>}, {pipeline_mode = #tpu.pipeline_mode<synchronous>, transform_indices = @transform_5, window_bounds = array<i64: 128, 8>}, {transform_indices = @transform_6, window_bounds = array<i64: 256, 8>}]} {
    %c0 = arith.constant 0 : index
    %c0_0 = arith.constant 0 : index
    %0 = vector.load %arg1[%c0, %c0_0] : memref<256x16xf32, #tpu.memory_space<vmem>>, vector<256x16xf32>
    %1 = arith.truncf %0 : vector<256x16xf32> to vector<256x16xbf16>
    %c0_1 = arith.constant 0 : index
    %c0_2 = arith.constant 0 : index
    %2 = vector.load %arg2[%c0_1, %c0_2] : memref<16x192xbf16, #tpu.memory_space<vmem>>, vector<16x192xbf16>
    %cst = arith.constant dense<0.000000e+00> : vector<256x192xf32>
    %3 = tpu.matmul %1, %2, %cst {dimension_numbers = #tpu.dot_dimension_numbers<[1], [0], [0], [1], [0, 0, 1, 1], [], []>} : vector<256x16xbf16>, vector<16x192xbf16>, vector<256x192xf32> -> vector<256x192xf32>
    %4 = vector.extract_strided_slice %3 {offsets = [0, 0], sizes = [256, 128], strides = [1, 1]} : vector<256x192xf32> to vector<256x128xf32>
    %5 = vector.extract_strided_slice %3 {offsets = [0, 128], sizes = [256, 64], strides = [1, 1]} : vector<256x192xf32> to vector<256x64xf32>
    %c0_3 = arith.constant 0 : index
    %c0_4 = arith.constant 0 : index
    %6 = vector.load %arg3[%c0_3, %c0_4] : memref<1x64xf32, #tpu.memory_space<vmem>>, vector<1x64xf32>
    %7 = vector.broadcast %6 : vector<1x64xf32> to vector<256x64xf32>
    %8 = arith.addf %5, %7 : vector<256x64xf32>
    %cst_5 = arith.constant 0.000000e+00 : f32
    %9 = vector.broadcast %cst_5 : f32 to vector<256x64xf32>
    %10 = arith.maximumf %8, %9 : vector<256x64xf32>
    %11 = arith.truncf %10 : vector<256x64xf32> to vector<256x64xbf16>
    %c0_6 = arith.constant 0 : index
    %c0_7 = arith.constant 0 : index
    %12 = vector.load %arg4[%c0_6, %c0_7] : memref<64x128xbf16, #tpu.memory_space<vmem>>, vector<64x128xbf16>
    %cst_8 = arith.constant dense<0.000000e+00> : vector<256x128xf32>
    %13 = tpu.matmul %11, %12, %cst_8 {dimension_numbers = #tpu.dot_dimension_numbers<[1], [0], [0], [1], [0, 0, 1, 1], [], []>} : vector<256x64xbf16>, vector<64x128xbf16>, vector<256x128xf32> -> vector<256x128xf32>
    %c0_9 = arith.constant 0 : index
    %c0_10 = arith.constant 0 : index
    %14 = vector.load %arg5[%c0_9, %c0_10] : memref<1x128xf32, #tpu.memory_space<vmem>>, vector<1x128xf32>
    %15 = vector.broadcast %14 : vector<1x128xf32> to vector<256x128xf32>
    %16 = arith.addf %13, %15 : vector<256x128xf32>
    %17 = arith.mulf %16, %4 : vector<256x128xf32>
    %18 = arith.truncf %17 : vector<256x128xf32> to vector<256x128xbf16>
    %19 = arith.extf %18 : vector<256x128xbf16> to vector<256x128xf32>
    %20 = arith.subf %17, %19 : vector<256x128xf32>
    %21 = arith.truncf %20 : vector<256x128xf32> to vector<256x128xbf16>
    %c0_11 = arith.constant 0 : index
    %c0_12 = arith.constant 0 : index
    %22 = vector.load %arg6[%c0_11, %c0_12] : memref<128x8xbf16, #tpu.memory_space<vmem>>, vector<128x8xbf16>
    %cst_13 = arith.constant dense<0.000000e+00> : vector<256x8xf32>
    %23 = tpu.matmul %18, %22, %cst_13 {dimension_numbers = #tpu.dot_dimension_numbers<[1], [0], [0], [1], [0, 0, 1, 1], [], []>} : vector<256x128xbf16>, vector<128x8xbf16>, vector<256x8xf32> -> vector<256x8xf32>
    %c0_14 = arith.constant 0 : index
    %c0_15 = arith.constant 0 : index
    %24 = vector.load %arg6[%c0_14, %c0_15] : memref<128x8xbf16, #tpu.memory_space<vmem>>, vector<128x8xbf16>
    %cst_16 = arith.constant dense<0.000000e+00> : vector<256x8xf32>
    %25 = tpu.matmul %21, %24, %cst_16 {dimension_numbers = #tpu.dot_dimension_numbers<[1], [0], [0], [1], [0, 0, 1, 1], [], []>} : vector<256x128xbf16>, vector<128x8xbf16>, vector<256x8xf32> -> vector<256x8xf32>
    %26 = arith.addf %23, %25 : vector<256x8xf32>
    %c0_17 = arith.constant 0 : index
    %c0_18 = arith.constant 0 : index
    %27 = vector.load %arg7[%c0_17, %c0_18] : memref<256x8xf32, #tpu.memory_space<vmem>>, vector<256x8xf32>
    tpu.vector_store %arg7[%c0_17, %c0_18], %26 {strides = array<i32>} : memref<256x8xf32, #tpu.memory_space<vmem>>, vector<256x8xf32>,
    return
  }
  func.func @transform_0(%arg0: i32) -> (i32, i32) {
    %c0_i32 = arith.constant 0 : i32
    %c0_i32_0 = arith.constant 0 : i32
    return %arg0, %c0_i32 : i32, i32
  }
  func.func @transform_1(%arg0: i32) -> (i32, i32) {
    %c0_i32 = arith.constant 0 : i32
    %c0_i32_0 = arith.constant 0 : i32
    %c0_i32_1 = arith.constant 0 : i32
    return %c0_i32, %c0_i32_0 : i32, i32
  }
  func.func @transform_2(%arg0: i32) -> (i32, i32) {
    %c0_i32 = arith.constant 0 : i32
    %c0_i32_0 = arith.constant 0 : i32
    %c0_i32_1 = arith.constant 0 : i32
    return %c0_i32, %c0_i32_0 : i32, i32
  }
  func.func @transform_3(%arg0: i32) -> (i32, i32) {
    %c0_i32 = arith.constant 0 : i32
    %c0_i32_0 = arith.constant 0 : i32
    %c0_i32_1 = arith.constant 0 : i32
    return %c0_i32, %c0_i32_0 : i32, i32
  }
  func.func @transform_4(%arg0: i32) -> (i32, i32) {
    %c0_i32 = arith.constant 0 : i32
    %c0_i32_0 = arith.constant 0 : i32
    %c0_i32_1 = arith.constant 0 : i32
    return %c0_i32, %c0_i32_0 : i32, i32
  }
  func.func @transform_5(%arg0: i32) -> (i32, i32) {
    %c0_i32 = arith.constant 0 : i32
    %c0_i32_0 = arith.constant 0 : i32
    %c0_i32_1 = arith.constant 0 : i32
    return %c0_i32, %c0_i32_0 : i32, i32
  }
  func.func @transform_6(%arg0: i32) -> (i32, i32) {
    %c0_i32 = arith.constant 0 : i32
    %c0_i32_0 = arith.constant 0 : i32
    return %arg0, %c0_i32 : i32, i32
  }
}

</mosaic_0001>

<bundles_post_ra>
// kernel: tpu_custom_call.1
= control target key start
LH: loop header
LB: loop body
LE: loop exit
PB: predicated region body
PF: predicated region fallthrough
CT: control target
= control target key end

     0   :  { %s1868_s21 = smov 0   ;;  %s2360_s0 = inlined_call_operand.vmem [shape: f32[2048,16], index: 0, kind: input, shape index: {}]   ;;  %s2361_s1 = inlined_call_operand.vmem [shape: bf16[16,192], index: 1, kind: input, shape index: {}]   ;;  %s2362_s2 = inlined_call_operand.vmem [shape: f32[1,64], index: 2, kind: input, shape index: {}]   ;;  %s2363_s3 = inlined_call_operand.vmem [shape: bf16[64,128], index: 3, kind: input, shape index: {}]   ;;  %s2364_s4 = inlined_call_operand.vmem [shape: f32[1,128], index: 4, kind: input, shape index: {}]   ;;  %s2365_s5 = inlined_call_operand.vmem [shape: bf16[128,8], index: 5, kind: input, shape index: {}]   ;;  %s2366_s6 = inlined_call_operand.vmem [shape: f32[2048,8], index: 6, kind: output, shape index: {}]  }
   0x1 LB: > { %s1497_s22 = sadd.s32 4294967295, %s1830_s21   ;;  %p1501_p0 = scmp.ge.s32.totalorder %s1830_s21, 1  ;;  %s1830_s21 = sphi %s1868_s21, %s16_s21  }
   0x2   : > { %p213_p1 = scmp.lt.s32.totalorder %s1830_s21, 9 }
   0x4   : > { %p214_p2 = pnand %p1501_p0, %p213_p1 }
   0x5   : > { %v1809_v0 = vld [vmem:[%s2361_s1 + $0x4] ss:$8 sps:$4 sm:$0xff] (!%p214_p2)   ;;  %s1502_s25 = sshll.u32 (!%p214_p2), %s1497_s22, 5  ;;  %v1811_v1 = vld [vmem:[%s2361_s1] ss:$8 sps:$4 sm:$0xff] (!%p214_p2)   ;;  %v1832_v2 = vmov (!%p214_p2), 0  }
   0x6   : > { %217 = sbr.rel (%p214_p2) target bundleno = 868 (0x364), region = 44  ;;  %397 = vmatprep.mubr.bf16.mxu0 (!%p214_p2), %v1832_v2  ;;  %p244_p3 = scmp.lt.s32.totalorder (!%p214_p2), %s1502_s25, 255  ;;  %365 = vmatprep.subr.bf16.mxu0 (!%p214_p2), %v1809_v0  ;;  %v1812_v3 = vld [vmem:[%s2363_s3] sm:$0xff] (!%p214_p2)   ;;  %v1813_v4 = vld [vmem:[%s2363_s3 + $0x8] sm:$0xff] (!%p214_p2)   ;;  %vm316_vm0 = vcmask (!%p214_p2), 130048   ;;  %v1814_v43 = vld [vmem:[%s2363_s3 + $0x10] sm:$0xff] (!%p214_p2)  }
   0x7   : > { %366 = vmatpush1.bf16.msra.mxu0 (!%p214_p2), %v1811_v1  ;;  %1760 = vmatprep.subr.bf16.mxu1 (!%p214_p2), %v1812_v3  ;;  %v1815_v45 = vld [vmem:[%s2363_s3 + $0x18] sm:$0xff] (!%p214_p2)   ;;  %v1971_v55 = vld [vmem:[%s2362_s2] ss:$0 sm:$0xff] (!%p214_p2)  ;;  %vm684_vm1 = vcmask (!%p214_p2), 523264   ;;  %vm1408_vm2 = vcmask (!%p214_p2), 64512  }
   0x8   : > { %1624 = vmatprep.subr.bf16.mxu0 (!%p214_p2), %v1812_v3  ;;  %1764 = vmatpush3.bf16.msra.mxu1 (!%p214_p2), %v1812_v3  ;;  %v1981_v60 = vld [vmem:[%s2365_s5] sm:$0xff] (!%p214_p2)  }
   0x9   : > { %1761 = vmatprep.subr.bf16.mxu1 (!%p214_p2), %v1813_v4 }
   0xc   : > { %1765 = vmatpush3.bf16.msra.mxu1 (!%p214_p2), %v1813_v4 }
   0xd   : > { %s2368_s25 = smov (!%p244_p3, %s1502_s25), 255  ;;  %1762 = vmatprep.subr.bf16.mxu1 %v1814_v43 }
   0xe   : > { %s1503_s8 = sshll.u32 %s2368_s25, 3 }
   0xf   : > { %s1897_s11 = scalar_lea.vmem %s2360_s0, %s1503_s8  ;;  %s2291_s17 = scalar_lea.vmem %s2366_s6, %s1503_s8 }
  0x10   : > { %v256_v5 = vld [vmem:[%s1897_s11] sm:$0xff]  ;;  %v257_v6 = vld [vmem:[%s1897_s11 + $0x8] sm:$0xff]  ;;  %v258_v8 = vld [vmem:[%s1897_s11 + $0x10] sm:$0xff]  ;;  %1766 = vmatpush3.bf16.msra.mxu1 %v1814_v43 }
  0x11   : > { %v288_v7 = vpack.c.bf16 %v257_v6, %v256_v5  ;;  %v259_v9 = vld [vmem:[%s1897_s11 + $0x18] sm:$0xff]  ;;  %v260_v11 = vld [vmem:[%s1897_s11 + $0x20] sm:$0xff]  ;;  %v261_v12 = vld [vmem:[%s1897_s11 + $0x28] sm:$0xff]  ;;  %1763 = vmatprep.subr.bf16.mxu1 %v1815_v45 }
  0x12   : > { %v289_v10 = vpack.c.bf16 %v259_v9, %v258_v8  ;;  %v290_v13 = vpack.c.bf16 %v261_v12, %v260_v11  ;;  %v262_v14 = vld [vmem:[%s1897_s11 + $0x30] sm:$0xff]  ;;  %v263_v15 = vld [vmem:[%s1897_s11 + $0x38] sm:$0xff]  ;;  %v264_v17 = vld [vmem:[%s1897_s11 + $0x40] sm:$0xff] }
  0x13   : > { %1508 = vmatmul.mubr.msk.bf16.vlgmr.msra.gmra.mrb[0].mxu0 %vm316_vm0, %v288_v7  ;;  %v291_v16 = vpack.c.bf16 %v263_v15, %v262_v14  ;;  %v265_v18 = vld [vmem:[%s1897_s11 + $0x48] sm:$0xff]  ;;  %v266_v20 = vld [vmem:[%s1897_s11 + $0x50] sm:$0xff]  ;;  %v267_v21 = vld [vmem:[%s1897_s11 + $0x58] sm:$0xff] }
  0x14   : > { %407 = vmatprep.mubr.bf16.mxu0 %v1832_v2  ;;  %1625 = vmatpush3.bf16.msra.mxu0 %v1812_v3  ;;  %v292_v19 = vpack.c.bf16 %v265_v18, %v264_v17  ;;  %v293_v22 = vpack.c.bf16 %v267_v21, %v266_v20  ;;  %v268_v23 = vld [vmem:[%s1897_s11 + $0x60] sm:$0xff]  ;;  %v269_v24 = vld [vmem:[%s1897_s11 + $0x68] sm:$0xff]  ;;  %v270_v26 = vld [vmem:[%s1897_s11 + $0x70] sm:$0xff] }
  0x15   : > { %1626 = vmatprep.subr.bf16.mxu0 %v1813_v4  ;;  %v294_v25 = vpack.c.bf16 %v269_v24, %v268_v23  ;;  %v271_v27 = vld [vmem:[%s1897_s11 + $0x78] sm:$0xff]  ;;  %v272_v29 = vld [vmem:[%s1897_s11 + $0x80] sm:$0xff]  ;;  %v273_v30 = vld [vmem:[%s1897_s11 + $0x88] sm:$0xff]  ;;  %1767 = vmatpush3.bf16.msra.mxu1 %v1815_v45 }
  0x16   : > { %v295_v28 = vpack.c.bf16 %v271_v27, %v270_v26  ;;  %v296_v31 = vpack.c.bf16 %v273_v30, %v272_v29  ;;  %v274_v32 = vld [vmem:[%s1897_s11 + $0x90] sm:$0xff]  ;;  %v275_v33 = vld [vmem:[%s1897_s11 + $0x98] sm:$0xff]  ;;  %v276_v35 = vld [vmem:[%s1897_s11 + $0xa0] sm:$0xff]  ;;  %1664 = vmatprep.subr.bf16.mxu1 %v1981_v60 }
  0x17   : > { %v297_v34 = vpack.c.bf16 %v275_v33, %v274_v32  ;;  %v277_v36 = vld [vmem:[%s1897_s11 + $0xa8] sm:$0xff]  ;;  %v278_v38 = vld [vmem:[%s1897_s11 + $0xb0] sm:$0xff]  ;;  %v279_v39 = vld [vmem:[%s1897_s11 + $0xb8] sm:$0xff] }
  0x18   : > { %1627 = vmatpush3.bf16.msra.mxu0 %v1813_v4  ;;  %v298_v37 = vpack.c.bf16 %v277_v36, %v276_v35  ;;  %v299_v40 = vpack.c.bf16 %v279_v39, %v278_v38  ;;  %v280_v41 = vld [vmem:[%s1897_s11 + $0xc0] sm:$0xff]  ;;  %v281_v42 = vld [vmem:[%s1897_s11 + $0xc8] sm:$0xff]  ;;  %v282_v46 = vld [vmem:[%s1897_s11 + $0xd0] sm:$0xff] }
  0x19   : > { %v300_v44 = vpack.c.bf16 %v281_v42, %v280_v41  ;;  %1628 = vmatprep.subr.bf16.mxu0 %v1814_v43  ;;  %v283_v47 = vld [vmem:[%s1897_s11 + $0xd8] sm:$0xff]  ;;  %v284_v49 = vld [vmem:[%s1897_s11 + $0xe0] sm:$0xff]  ;;  %v285_v50 = vld [vmem:[%s1897_s11 + $0xe8] sm:$0xff] }
  0x1a   : > { %v301_v48 = vpack.c.bf16 %v283_v47, %v282_v46  ;;  %v302_v51 = vpack.c.bf16 %v285_v50, %v284_v49  ;;  %v286_v52 = vld [vmem:[%s1897_s11 + $0xf0] sm:$0xff]  ;;  %v287_v53 = vld [vmem:[%s1897_s11 + $0xf8] sm:$0xff] }
  0x1b   : > { %1509 = vmatmul.mubr.msk.bf16.gmra.mrb[4].mxu0 %vm316_vm0, %v289_v10  ;;  %v303_v54 = vpack.c.bf16 %v287_v53, %v286_v52 }
  0x1c   : > { %417 = vmatprep.mubr.bf16.mxu0 %v1832_v2  ;;  %1629 = vmatpush3.bf16.msra.mxu0 %v1814_v43 }
  0x1d   : > { %1630 = vmatprep.subr.bf16.mxu0 %v1815_v45 }
  0x20   : > { %1631 = vmatpush3.bf16.msra.mxu0 %v1815_v45 }
  0x23   : > { %1510 = vmatmul.mubr.msk.bf16.gmra.mrb[8].mxu0 %vm316_vm0, %v290_v13 }
  0x24   : > { %427 = vmatprep.mubr.bf16.mxu0 %v1832_v2 }
  0x2b   : > { %1511 = vmatmul.mubr.msk.bf16.gmra.mrb[12].mxu0 %vm316_vm0, %v291_v16 }
  0x2c   : > { %437 = vmatprep.mubr.bf16.mxu0 %v1832_v2 }
  0x33   : > { %1512 = vmatmul.mubr.msk.bf16.gmra.mrb[16].mxu0 %vm316_vm0, %v292_v19 }
  0x34   : > { %447 = vmatprep.mubr.bf16.mxu0 %v1832_v2 }
  0x3b   : > { %1513 = vmatmul.mubr.msk.bf16.gmra.mrb[20].mxu0 %vm316_vm0, %v293_v22 }
  0x3c   : > { %457 = vmatprep.mubr.bf16.mxu0 %v1832_v2 }
  0x43   : > { %1514 = vmatmul.mubr.msk.bf16.gmra.mrb[24].mxu0 %vm316_vm0, %v294_v25 }
  0x44   : > { %467 = vmatprep.mubr.bf16.mxu0 %v1832_v2 }
  0x4b   : > { %1515 = vmatmul.mubr.msk.bf16.gmra.mrb[28].mxu0 %vm316_vm0, %v295_v28 }
  0x4c   : > { %477 = vmatprep.mubr.bf16.mxu0 %v1832_v2 }
  0x53   : > { %1516 = vmatmul.mubr.msk.bf16.gmra.mrb[32].mxu0 %vm316_vm0, %v296_v31 }
  0x54   : > { %487 = vmatprep.mubr.bf16.mxu0 %v1832_v2 }
  0x5b   : > { %1517 = vmatmul.mubr.msk.bf16.gmra.mrb[36].mxu0 %vm316_vm0, %v297_v34 }
  0x5c   : > { %497 = vmatprep.mubr.bf16.mxu0 %v1832_v2 }
  0x63   : > { %1518 = vmatmul.mubr.msk.bf16.gmra.mrb[40].mxu0 %vm316_vm0, %v298_v37 }
  0x64   : > { %507 = vmatprep.mubr.bf16.mxu0 %v1832_v2 }
  0x6b   : > { %1519 = vmatmul.mubr.msk.bf16.gmra.mrb[44].mxu0 %vm316_vm0, %v299_v40 }
  0x6c   : > { %517 = vmatprep.mubr.bf16.mxu0 %v1832_v2 }
  0x73   : > { %1520 = vmatmul.mubr.msk.bf16.gmra.mrb[48].mxu0 %vm316_vm0, %v300_v44 }
  0x74   : > { %527 = vmatprep.mubr.bf16.mxu0 %v1832_v2 }
  0x7b   : > { %1521 = vmatmul.mubr.msk.bf16.gmra.mrb[52].mxu0 %vm316_vm0, %v301_v48 }
  0x7c   : > { %537 = vmatprep.mubr.bf16.mxu0 %v1832_v2 }
  0x83   : > { %1522 = vmatmul.mubr.msk.bf16.gmra.mrb[56].mxu0 %vm316_vm0, %v302_v51 }
  0x84   : > { %547 = vmatprep.mubr.bf16.mxu0 %v1832_v2 }
  0x8b   : > { %1523 = vmatmul.mubr.msk.bf16.gmra.mrb[60].mxu0 %vm316_vm0, %v303_v54 }
  0xe6   : > { %v1973_v56 = vpop.f32.mrb[0].mxu0 }
  0xe7   : > { %v401_v57 = vpop.f32.mrb[1].mxu0 }
  0xe8   : > { %v565_v58 = vadd.f32 %v1971_v55, %v401_v57  ;;  %v1976_v59 = vpop.f32.mrb[2].mxu0 }
  0xe9   : > { %v405_v61 = vpop.f32.mrb[3].mxu0 }
  0xea   : > { %v566_v62 = vadd.f32 %v1971_v55, %v405_v61  ;;  %v597_v63 = vmax.f32 %v565_v58, 0.0 }
  0xec   : > { %v598_v0 = vmax.f32 %v566_v62, 0.0 }
  0xee   : > { %v629_v1 = vpack.c.bf16 %v598_v0, %v597_v63  ;;  %v1985_v2 = vpop.f32.mrb[4].mxu0 }
  0xef   : > { %v411_v3 = vpop.f32.mrb[5].mxu0 }
  0xf0   : > { %v567_v4 = vadd.f32 %v1971_v55, %v411_v3  ;;  %v1988_v5 = vpop.f32.mrb[6].mxu0  ;;  %1632 = vmatprep.mubr.msk.bf16.mxu0 %vm684_vm1, %v629_v1 }
  0xf1   : > { %v415_v6 = vpop.f32.mrb[7].mxu0 }
  0xf2   : > { %v568_v7 = vadd.f32 %v1971_v55, %v415_v6  ;;  %v599_v8 = vmax.f32 %v567_v4, 0.0 }
  0xf4   : > { %v600_v9 = vmax.f32 %v568_v7, 0.0 }
  0xf6   : > { %v630_v10 = vpack.c.bf16 %v600_v9, %v599_v8  ;;  %v1992_v11 = vpop.f32.mrb[8].mxu0 }
  0xf7   : > { %v421_v12 = vpop.f32.mrb[9].mxu0 }
  0xf8   : > { %v569_v13 = vadd.f32 %v1971_v55, %v421_v12  ;;  %v1995_v14 = vpop.f32.mrb[10].mxu0  ;;  %1633 = vmatmul.mubr.msk.bf16.vlgmr.msra.gmra.mrb[64].mxu0 %vm684_vm1, %v630_v10 }
  0xf9   : > { %v425_v15 = vpop.f32.mrb[11].mxu0 }
  0xfa   : > { %v570_v16 = vadd.f32 %v1971_v55, %v425_v15  ;;  %v601_v17 = vmax.f32 %v569_v13, 0.0 }
  0xfc   : > { %v602_v18 = vmax.f32 %v570_v16, 0.0 }
  0xfe   : > { %v631_v19 = vpack.c.bf16 %v602_v18, %v601_v17  ;;  %v1999_v20 = vpop.f32.mrb[12].mxu0 }
  0xff   : > { %v431_v21 = vpop.f32.mrb[13].mxu0 }
 0x100   : > { %v571_v22 = vadd.f32 %v1971_v55, %v431_v21  ;;  %v2002_v23 = vpop.f32.mrb[14].mxu0  ;;  %1636 = vmatprep.mubr.msk.bf16.mxu0 %vm684_vm1, %v631_v19 }
 0x101   : > { %v435_v24 = vpop.f32.mrb[15].mxu0 }
 0x102   : > { %v572_v25 = vadd.f32 %v1971_v55, %v435_v24  ;;  %v603_v26 = vmax.f32 %v571_v22, 0.0 }
 0x104   : > { %v604_v27 = vmax.f32 %v572_v25, 0.0 }
 0x106   : > { %v632_v28 = vpack.c.bf16 %v604_v27, %v603_v26  ;;  %v2006_v29 = vpop.f32.mrb[16].mxu0 }
 0x107   : > { %v441_v30 = vpop.f32.mrb[17].mxu0 }
 0x108   : > { %v573_v31 = vadd.f32 %v1971_v55, %v441_v30  ;;  %v2009_v32 = vpop.f32.mrb[18].mxu0  ;;  %1637 = vmatmul.mubr.msk.bf16.gmra.mrb[68].mxu0 %vm684_vm1, %v632_v28 }
 0x109   : > { %v445_v33 = vpop.f32.mrb[19].mxu0 }
 0x10a   : > { %v574_v34 = vadd.f32 %v1971_v55, %v445_v33  ;;  %v605_v35 = vmax.f32 %v573_v31, 0.0  ;;  %v2053_v31 = vld [vmem:[%s2365_s5 + $0x8] sm:$0xff]  }
 0x10c   : > { %v606_v36 = vmax.f32 %v574_v34, 0.0 }
 0x10e   : > { %v633_v37 = vpack.c.bf16 %v606_v36, %v605_v35  ;;  %v2013_v38 = vpop.f32.mrb[20].mxu0 }
 0x10f   : > { %v451_v39 = vpop.f32.mrb[21].mxu0 }
 0x110   : > { %v575_v40 = vadd.f32 %v1971_v55, %v451_v39  ;;  %v2016_v41 = vpop.f32.mrb[22].mxu0  ;;  %1640 = vmatprep.mubr.msk.bf16.mxu0 %vm684_vm1, %v633_v37  ;;  %v2065_v39 = vld [vmem:[%s2365_s5 + $0x10] sm:$0xff]  }
 0x111   : > { %v455_v42 = vpop.f32.mrb[23].mxu0 }
 0x112   : > { %v576_v43 = vadd.f32 %v1971_v55, %v455_v42  ;;  %v607_v44 = vmax.f32 %v575_v40, 0.0 }
 0x114   : > { %v608_v45 = vmax.f32 %v576_v43, 0.0 }
 0x116   : > { %v634_v46 = vpack.c.bf16 %v608_v45, %v607_v44  ;;  %v2020_v47 = vpop.f32.mrb[24].mxu0  ;;  %v2074_v45 = vld [vmem:[%s2365_s5 + $0x18] sm:$0xff]  }
 0x117   : > { %v461_v48 = vpop.f32.mrb[25].mxu0 }
 0x118   : > { %v577_v49 = vadd.f32 %v1971_v55, %v461_v48  ;;  %v2023_v50 = vpop.f32.mrb[26].mxu0  ;;  %1641 = vmatmul.mubr.msk.bf16.gmra.mrb[72].mxu0 %vm684_vm1, %v634_v46 }
 0x119   : > { %v465_v51 = vpop.f32.mrb[27].mxu0 }
 0x11a   : > { %v578_v52 = vadd.f32 %v1971_v55, %v465_v51  ;;  %v609_v53 = vmax.f32 %v577_v49, 0.0 }
 0x11c   : > { %v610_v54 = vmax.f32 %v578_v52, 0.0 }
 0x11e   : > { %v635_v57 = vpack.c.bf16 %v610_v54, %v609_v53  ;;  %v2027_v58 = vpop.f32.mrb[28].mxu0 }
 0x11f   : > { %v471_v61 = vpop.f32.mrb[29].mxu0 }
 0x120   : > { %v579_v62 = vadd.f32 %v1971_v55, %v471_v61  ;;  %v2030_v63 = vpop.f32.mrb[30].mxu0  ;;  %1644 = vmatprep.mubr.msk.bf16.mxu0 %vm684_vm1, %v635_v57 }
 0x121   : > { %v475_v0 = vpop.f32.mrb[31].mxu0 }
 0x122   : > { %v580_v1 = vadd.f32 %v1971_v55, %v475_v0  ;;  %v611_v3 = vmax.f32 %v579_v62, 0.0 }
 0x124   : > { %v612_v4 = vmax.f32 %v580_v1, 0.0 }
 0x126   : > { %v636_v6 = vpack.c.bf16 %v612_v4, %v611_v3  ;;  %v2034_v7 = vpop.f32.mrb[32].mxu0 }
 0x127   : > { %v481_v8 = vpop.f32.mrb[33].mxu0 }
 0x128   : > { %v581_v9 = vadd.f32 %v1971_v55, %v481_v8  ;;  %v2037_v10 = vpop.f32.mrb[34].mxu0  ;;  %1645 = vmatmul.mubr.msk.bf16.gmra.mrb[76].mxu0 %vm684_vm1, %v636_v6  ;;  %v2094_v6 = vld [vmem:[%s2365_s5 + $0x20] sm:$0xff]  }
 0x129   : > { %v485_v12 = vpop.f32.mrb[35].mxu0 }
 0x12a   : > { %v582_v13 = vadd.f32 %v1971_v55, %v485_v12  ;;  %v613_v15 = vmax.f32 %v581_v9, 0.0 }
 0x12c   : > { %v614_v16 = vmax.f32 %v582_v13, 0.0 }
 0x12e   : > { %v2041_v17 = vpop.f32.mrb[36].mxu0  ;;  %v637_v18 = vpack.c.bf16 %v614_v16, %v613_v15  ;;  %v2103_v15 = vld [vmem:[%s2365_s5 + $0x28] sm:$0xff]  }
 0x12f   : > { %v491_v19 = vpop.f32.mrb[37].mxu0 }
 0x130   : > { %v583_v21 = vadd.f32 %v1971_v55, %v491_v19  ;;  %v2044_v22 = vpop.f32.mrb[38].mxu0  ;;  %1648 = vmatprep.mubr.msk.bf16.mxu1 %vm684_vm1, %v637_v18 }
 0x131   : > { %v495_v24 = vpop.f32.mrb[39].mxu0 }
 0x132   : > { %v584_v25 = vadd.f32 %v1971_v55, %v495_v24  ;;  %v615_v26 = vmax.f32 %v583_v21, 0.0 }
 0x134   : > { %v616_v27 = vmax.f32 %v584_v25, 0.0  ;;  %v2115_v25 = vld [vmem:[%s2365_s5 + $0x30] sm:$0xff]  }
 0x136   : > { %v638_v28 = vpack.c.bf16 %v616_v27, %v615_v26  ;;  %v2048_v30 = vpop.f32.mrb[40].mxu0 }
 0x137   : > { %v501_v33 = vpop.f32.mrb[41].mxu0 }
 0x138   : > { %v585_v34 = vadd.f32 %v1971_v55, %v501_v33  ;;  %v2056_v35 = vpop.f32.mrb[42].mxu0  ;;  %1649 = vmatmul.mubr.msk.bf16.vlgmr.msra.gmra.mrb[0].mxu1 %vm684_vm1, %v638_v28 }
 0x139   : > { %v505_v36 = vpop.f32.mrb[43].mxu0  ;;  %1665 = vmatpush3.bf16.msra.mxu1 %v1981_v60 }
 0x13a   : > { %v586_v37 = vadd.f32 %v1971_v55, %v505_v36  ;;  %1666 = vmatprep.subr.bf16.mxu1 %v2053_v31  ;;  %v617_v40 = vmax.f32 %v585_v34, 0.0  ;;  %v2124_v34 = vld [vmem:[%s2365_s5 + $0x38] sm:$0xff]  }
 0x13c   : > { %v618_v42 = vmax.f32 %v586_v37, 0.0 }
 0x13d   : > { %1667 = vmatpush3.bf16.msra.mxu1 %v2053_v31 }
 0x13e   : > { %v639_v43 = vpack.c.bf16 %v618_v42, %v617_v40  ;;  %v2068_v44 = vpop.f32.mrb[44].mxu0  ;;  %1668 = vmatprep.subr.bf16.mxu1 %v2065_v39 }
 0x13f   : > { %v511_v46 = vpop.f32.mrb[45].mxu0 }
 0x140   : > { %v587_v48 = vadd.f32 %v1971_v55, %v511_v46  ;;  %v2077_v49 = vpop.f32.mrb[46].mxu0  ;;  %1652 = vmatprep.mubr.msk.bf16.mxu1 %vm684_vm1, %v639_v43 }
 0x141   : > { %v515_v51 = vpop.f32.mrb[47].mxu0  ;;  %1669 = vmatpush3.bf16.msra.mxu1 %v2065_v39 }
 0x142   : > { %v588_v52 = vadd.f32 %v1971_v55, %v515_v51  ;;  %1670 = vmatprep.subr.bf16.mxu1 %v2074_v45  ;;  %v619_v53 = vmax.f32 %v587_v48, 0.0 }
 0x144   : > { %v620_v54 = vmax.f32 %v588_v52, 0.0 }
 0x145   : > { %1671 = vmatpush3.bf16.msra.mxu1 %v2074_v45 }
 0x146   : > { %v640_v57 = vpack.c.bf16 %v620_v54, %v619_v53  ;;  %v2084_v61 = vpop.f32.mrb[48].mxu0  ;;  %1672 = vmatprep.subr.bf16.mxu1 %v2094_v6 }
 0x147   : > { %v521_v62 = vpop.f32.mrb[49].mxu0 }
 0x148   : > { %v589_v0 = vadd.f32 %v1971_v55, %v521_v62  ;;  %v2087_v1 = vpop.f32.mrb[50].mxu0  ;;  %1653 = vmatmul.mubr.msk.bf16.gmra.mrb[4].mxu1 %vm684_vm1, %v640_v57 }
 0x149   : > { %v525_v3 = vpop.f32.mrb[51].mxu0  ;;  %1673 = vmatpush3.bf16.msra.mxu1 %v2094_v6 }
 0x14a   : > { %v590_v4 = vadd.f32 %v1971_v55, %v525_v3  ;;  %v621_v8 = vmax.f32 %v589_v0, 0.0  ;;  %1674 = vmatprep.subr.bf16.mxu1 %v2103_v15 }
 0x14c   : > { %v622_v9 = vmax.f32 %v590_v4, 0.0 }
 0x14d   : > { %1675 = vmatpush3.bf16.msra.mxu1 %v2103_v15 }
 0x14e   : > { %v641_v12 = vpack.c.bf16 %v622_v9, %v621_v8  ;;  %v2098_v13 = vpop.f32.mrb[52].mxu0  ;;  %1676 = vmatprep.subr.bf16.mxu1 %v2115_v25  ;;  %v2145_v9 = vld [vmem:[%s2364_s4] ss:$0 sm:$0xff] }
 0x14f   : > { %v531_v16 = vpop.f32.mrb[53].mxu0 }
 0x150   : > { %v591_v18 = vadd.f32 %v1971_v55, %v531_v16  ;;  %v2106_v19 = vpop.f32.mrb[54].mxu0  ;;  %1656 = vmatprep.mubr.msk.bf16.mxu1 %vm684_vm1, %v641_v12 }
 0x151   : > { %v535_v21 = vpop.f32.mrb[55].mxu0  ;;  %1677 = vmatpush3.bf16.msra.mxu1 %v2115_v25 }
 0x152   : > { %v592_v24 = vadd.f32 %v1971_v55, %v535_v21  ;;  %v623_v26 = vmax.f32 %v591_v18, 0.0  ;;  %1678 = vmatprep.subr.bf16.mxu1 %v2124_v34 }
 0x154   : > { %v624_v27 = vmax.f32 %v592_v24, 0.0 }
 0x155   : > { %1679 = vmatpush3.bf16.msra.mxu1 %v2124_v34 }
 0x156   : > { %v642_v28 = vpack.c.bf16 %v624_v27, %v623_v26  ;;  %v2119_v33 = vpop.f32.mrb[56].mxu0  ;;  %1712 = vmatprep.subr.bf16.mxu1 %v1981_v60 }
 0x157   : > { %v541_v36 = vpop.f32.mrb[57].mxu0 }
 0x158   : > { %v593_v37 = vadd.f32 %v1971_v55, %v541_v36  ;;  %v2127_v40 = vpop.f32.mrb[58].mxu0  ;;  %1657 = vmatmul.mubr.msk.bf16.gmra.mrb[8].mxu1 %vm684_vm1, %v642_v28 }
 0x159   : > { %v545_v42 = vpop.f32.mrb[59].mxu0 }
 0x15a   : > { %v594_v43 = vadd.f32 %v1971_v55, %v545_v42  ;;  %v625_v46 = vmax.f32 %v593_v37, 0.0 }
 0x15c   : > { %v626_v48 = vmax.f32 %v594_v43, 0.0 }
 0x15e   : > { %v643_v51 = vpack.c.bf16 %v626_v48, %v625_v46  ;;  %v2134_v52 = vpop.f32.mrb[60].mxu0 }
 0x15f   : > { %v551_v53 = vpop.f32.mrb[61].mxu0 }
 0x160   : > { %v595_v54 = vadd.f32 %v1971_v55, %v551_v53  ;;  %v2137_v57 = vpop.f32.mrb[62].mxu0  ;;  %1660 = vmatprep.mubr.msk.bf16.mxu1 %vm684_vm1, %v643_v51 }
 0x161   : > { %v555_v62 = vpop.f32.mrb[63].mxu0 }
 0x162   : > { %v596_v0 = vadd.f32 %v1971_v55, %v555_v62  ;;  %v627_v3 = vmax.f32 %v595_v54, 0.0 }
 0x164   : > { %v628_v4 = vmax.f32 %v596_v0, 0.0 }
 0x166   : > { %v644_v8 = vpack.c.bf16 %v628_v4, %v627_v3 }
 0x168   : > { %1661 = vmatmul.mubr.msk.bf16.gmra.mrb[12].mxu1 %vm684_vm1, %v644_v8 }
 0x1cb   : > { %v1634_v12 = vpop.f32.mrb[64].mxu0 }
 0x1cc   : > { %v776_v16 = vadd.f32 %v1634_v12, %v2145_v9  ;;  %v767_v18 = vpop.f32.mrb[65].mxu0 }
 0x1cd   : > { %v768_v21 = vadd.f32 %v2145_v9, %v767_v18  ;;  %v1635_v24 = vpop.f32.mrb[66].mxu0 }
 0x1ce   : > { %v896_v26 = vmul.f32 %v776_v16, %v1985_v2  ;;  %v779_v55 = vadd.f32 %v1635_v24, %v2145_v9  ;;  %v770_v27 = vpop.f32.mrb[67].mxu0 }
 0x1cf   : > { %v894_v28 = vmul.f32 %v768_v21, %v1973_v56  ;;  %v771_v36 = vadd.f32 %v2145_v9, %v770_v27 }
 0x1d0   : > { %v897_v37 = vmul.f32 %v779_v55, %v1988_v5 }
 0x1d1   : > { %v895_v42 = vmul.f32 %v771_v36, %v1976_v59 }
 0x1d2   : > { %v2155_v43 = vpack.c.bf16 %v897_v37, %v896_v26 }
 0x1d3   : > { %v2157_v46 = vpack.c.bf16 %v895_v42, %v894_v28 }
 0x1d4   : > { %v944_v48 = vunpack.c.l.bf16 %v2155_v43  ;;  %v945_v51 = vunpack.c.h.bf16 %v2155_v43 }
 0x1d5   : > { %v943_v2 = vunpack.c.h.bf16 %v2157_v46  ;;  %v942_v53 = vunpack.c.l.bf16 %v2157_v46 }
 0x1d6   : > { %v976_v54 = vsub.f32 %v896_v26, %v944_v48  ;;  %v977_v56 = vsub.f32 %v897_v37, %v945_v51 }
 0x1d7   : > { %v975_v62 = vsub.f32 %v895_v42, %v943_v2  ;;  %v974_v0 = vsub.f32 %v894_v28, %v942_v53 }
 0x1d8   : > { %v1007_v3 = vpack.c.bf16 %v977_v56, %v976_v54 }
 0x1d9   : > { %v1006_v5 = vpack.c.bf16 %v975_v62, %v974_v0 }
 0x1db   : > { %v1638_v4 = vpop.f32.mrb[68].mxu0  ;;  %1680 = vmatprep.mubr.bf16.mxu1 %v1006_v5 }
 0x1dc   : > { %v792_v59 = vadd.f32 %v1638_v4, %v2145_v9  ;;  %v783_v8 = vpop.f32.mrb[69].mxu0  ;;  %1681 = vmatmul.mubr.bf16.vlgmr.msra.gmra.mrb[16].mxu1 %v1007_v3 }
 0x1dd   : > { %v784_v12 = vadd.f32 %v2145_v9, %v783_v8  ;;  %v1639_v16 = vpop.f32.mrb[70].mxu0  ;;  %1713 = vmatpush3.bf16.msra.mxu1 %v1981_v60 }
 0x1de   : > { %v900_v18 = vmul.f32 %v792_v59, %v1999_v20  ;;  %v795_v21 = vadd.f32 %v1639_v16, %v2145_v9  ;;  %v786_v24 = vpop.f32.mrb[71].mxu0  ;;  %1714 = vmatprep.subr.bf16.mxu1 %v2053_v31 }
 0x1df   : > { %v898_v26 = vmul.f32 %v784_v12, %v1992_v11  ;;  %v787_v55 = vadd.f32 %v2145_v9, %v786_v24 }
 0x1e0   : > { %v901_v27 = vmul.f32 %v795_v21, %v2002_v23 }
 0x1e1   : > { %v899_v28 = vmul.f32 %v787_v55, %v1995_v14  ;;  %1715 = vmatpush3.bf16.msra.mxu1 %v2053_v31 }
 0x1e2   : > { %v2174_v36 = vpack.c.bf16 %v901_v27, %v900_v18  ;;  %1716 = vmatprep.subr.bf16.mxu1 %v2065_v39 }
 0x1e3   : > { %v2177_v60 = vpack.c.bf16 %v899_v28, %v898_v26 }
 0x1e4   : > { %v949_v20 = vunpack.c.h.bf16 %v2174_v36  ;;  %v948_v37 = vunpack.c.l.bf16 %v2174_v36 }
 0x1e5   : > { %v947_v11 = vunpack.c.h.bf16 %v2177_v60  ;;  %v946_v42 = vunpack.c.l.bf16 %v2177_v60  ;;  %1717 = vmatpush3.bf16.msra.mxu1 %v2065_v39 }
 0x1e6   : > { %v981_v23 = vsub.f32 %v901_v27, %v949_v20  ;;  %v980_v14 = vsub.f32 %v900_v18, %v948_v37  ;;  %1718 = vmatprep.subr.bf16.mxu1 %v2074_v45 }
 0x1e7   : > { %v979_v31 = vsub.f32 %v899_v28, %v947_v11  ;;  %v978_v48 = vsub.f32 %v898_v26, %v946_v42 }
 0x1e8   : > { %v1009_v51 = vpack.c.bf16 %v981_v23, %v980_v14 }
 0x1e9   : > { %v1008_v2 = vpack.c.bf16 %v979_v31, %v978_v48  ;;  %1719 = vmatpush3.bf16.msra.mxu1 %v2074_v45 }
 0x1ea   : > { %1720 = vmatprep.subr.bf16.mxu1 %v2094_v6 }
 0x1eb   : > { %v1642_v53 = vpop.f32.mrb[72].mxu0  ;;  %1684 = vmatprep.mubr.bf16.mxu1 %v1008_v2 }
 0x1ec   : > { %v808_v54 = vadd.f32 %v1642_v53, %v2145_v9  ;;  %v799_v56 = vpop.f32.mrb[73].mxu0  ;;  %1685 = vmatmul.mubr.bf16.gmra.mrb[20].mxu1 %v1009_v51 }
 0x1ed   : > { %v800_v39 = vadd.f32 %v2145_v9, %v799_v56  ;;  %v1643_v62 = vpop.f32.mrb[74].mxu0  ;;  %1721 = vmatpush3.bf16.msra.mxu1 %v2094_v6 }
 0x1ee   : > { %v904_v0 = vmul.f32 %v808_v54, %v2013_v38  ;;  %v811_v3 = vadd.f32 %v1643_v62, %v2145_v9  ;;  %v802_v5 = vpop.f32.mrb[75].mxu0  ;;  %1722 = vmatprep.subr.bf16.mxu1 %v2103_v15 }
 0x1ef   : > { %v902_v45 = vmul.f32 %v800_v39, %v2006_v29  ;;  %v803_v4 = vadd.f32 %v2145_v9, %v802_v5 }
 0x1f0   : > { %v905_v59 = vmul.f32 %v811_v3, %v2016_v41 }
 0x1f1   : > { %v903_v8 = vmul.f32 %v803_v4, %v2009_v32  ;;  %1723 = vmatpush3.bf16.msra.mxu1 %v2103_v15 }
 0x1f2   : > { %v2198_v12 = vpack.c.bf16 %v905_v59, %v904_v0  ;;  %1724 = vmatprep.subr.bf16.mxu1 %v2115_v25 }
 0x1f3   : > { %v2201_v38 = vpack.c.bf16 %v903_v8, %v902_v45 }
 0x1f4   : > { %v953_v6 = vunpack.c.h.bf16 %v2198_v12  ;;  %v952_v16 = vunpack.c.l.bf16 %v2198_v12 }
 0x1f5   : > { %v951_v29 = vunpack.c.h.bf16 %v2201_v38  ;;  %v950_v18 = vunpack.c.l.bf16 %v2201_v38  ;;  %1725 = vmatpush3.bf16.msra.mxu1 %v2115_v25 }
 0x1f6   : > { %v985_v41 = vsub.f32 %v905_v59, %v953_v6  ;;  %v984_v32 = vsub.f32 %v904_v0, %v952_v16  ;;  %1726 = vmatprep.subr.bf16.mxu1 %v2124_v34 }
 0x1f7   : > { %v983_v15 = vsub.f32 %v903_v8, %v951_v29  ;;  %v982_v21 = vsub.f32 %v902_v45, %v950_v18 }
 0x1f8   : > { %v1011_v24 = vpack.c.bf16 %v985_v41, %v984_v32 }
 0x1f9   : > { %v1010_v26 = vpack.c.bf16 %v983_v15, %v982_v21  ;;  %1727 = vmatpush3.bf16.msra.mxu1 %v2124_v34 }
 0x1fb   : > { %v1646_v55 = vpop.f32.mrb[76].mxu0  ;;  %1688 = vmatprep.mubr.bf16.mxu1 %v1010_v26 }
 0x1fc   : > { %v824_v27 = vadd.f32 %v1646_v55, %v2145_v9  ;;  %v815_v28 = vpop.f32.mrb[77].mxu0  ;;  %1689 = vmatmul.mubr.bf16.gmra.mrb[24].mxu1 %v1011_v24 }
 0x1fd   : > { %v816_v20 = vadd.f32 %v2145_v9, %v815_v28  ;;  %v1647_v37 = vpop.f32.mrb[78].mxu0 }
 0x1fe   : > { %v908_v25 = vmul.f32 %v824_v27, %v2027_v58  ;;  %v827_v11 = vadd.f32 %v1647_v37, %v2145_v9  ;;  %v818_v42 = vpop.f32.mrb[79].mxu0 }
 0x1ff   : > { %v906_v23 = vmul.f32 %v816_v20, %v2020_v47  ;;  %v819_v14 = vadd.f32 %v2145_v9, %v818_v42 }
 0x200   : > { %v909_v34 = vmul.f32 %v827_v11, %v2030_v63 }
 0x201   : > { %v907_v31 = vmul.f32 %v819_v14, %v2023_v50 }
 0x202   : > { %v2218_v48 = vpack.c.bf16 %v909_v34, %v908_v25 }
 0x203   : > { %v2220_v51 = vpack.c.bf16 %v907_v31, %v906_v23 }
 0x204   : > { %v957_v2 = vunpack.c.h.bf16 %v2218_v48  ;;  %v956_v53 = vunpack.c.l.bf16 %v2218_v48 }
 0x205   : > { %v955_v58 = vunpack.c.h.bf16 %v2220_v51  ;;  %v954_v54 = vunpack.c.l.bf16 %v2220_v51 }
 0x206   : > { %v989_v56 = vsub.f32 %v909_v34, %v957_v2  ;;  %v988_v47 = vsub.f32 %v908_v25, %v956_v53 }
 0x207   : > { %v987_v39 = vsub.f32 %v907_v31, %v955_v58  ;;  %v986_v62 = vsub.f32 %v906_v23, %v954_v54 }
 0x208   : > { %v1013_v0 = vpack.c.bf16 %v989_v56, %v988_v47 }
 0x209   : > { %v1012_v63 = vpack.c.bf16 %v987_v39, %v986_v62 }
 0x20b   : > { %v1650_v3 = vpop.f32.mrb[0].mxu1  ;;  %1692 = vmatprep.mubr.bf16.mxu1 %v1012_v63 }
 0x20c   : > { %v840_v50 = vadd.f32 %v1650_v3, %v2145_v9  ;;  %v831_v5 = vpop.f32.mrb[1].mxu1  ;;  %1693 = vmatmul.mubr.bf16.gmra.mrb[28].mxu1 %v1013_v0 }
 0x20d   : > { %v832_v45 = vadd.f32 %v2145_v9, %v831_v5  ;;  %v1651_v4 = vpop.f32.mrb[2].mxu1 }
 0x20e   : > { %v912_v59 = vmul.f32 %v840_v50, %v2041_v17  ;;  %v843_v8 = vadd.f32 %v1651_v4, %v2145_v9  ;;  %v834_v6 = vpop.f32.mrb[3].mxu1 }
 0x20f   : > { %v910_v16 = vmul.f32 %v832_v45, %v2034_v7  ;;  %v835_v29 = vadd.f32 %v2145_v9, %v834_v6 }
 0x210   : > { %v913_v18 = vmul.f32 %v843_v8, %v2044_v22 }
 0x211   : > { %v911_v41 = vmul.f32 %v835_v29, %v2037_v10 }
 0x212   : > { %v2234_v32 = vpack.c.bf16 %v913_v18, %v912_v59 }
 0x213   : > { %v2236_v15 = vpack.c.bf16 %v911_v41, %v910_v16 }
 0x214   : > { %v961_v21 = vunpack.c.h.bf16 %v2234_v32  ;;  %v960_v24 = vunpack.c.l.bf16 %v2234_v32 }
 0x215   : > { %v959_v17 = vunpack.c.h.bf16 %v2236_v15  ;;  %v958_v26 = vunpack.c.l.bf16 %v2236_v15 }
 0x216   : > { %v993_v55 = vsub.f32 %v913_v18, %v961_v21  ;;  %v992_v7 = vsub.f32 %v912_v59, %v960_v24 }
 0x217   : > { %v991_v27 = vsub.f32 %v911_v41, %v959_v17  ;;  %v990_v28 = vsub.f32 %v910_v16, %v958_v26 }
 0x218   : > { %v1015_v20 = vpack.c.bf16 %v993_v55, %v992_v7 }
 0x219   : > { %v1014_v22 = vpack.c.bf16 %v991_v27, %v990_v28 }
 0x21b   : > { %v1654_v37 = vpop.f32.mrb[4].mxu1  ;;  %1696 = vmatprep.mubr.bf16.mxu1 %v1014_v22 }
 0x21c   : > { %v856_v10 = vadd.f32 %v1654_v37, %v2145_v9  ;;  %v847_v25 = vpop.f32.mrb[5].mxu1  ;;  %1697 = vmatmul.mubr.bf16.gmra.mrb[32].mxu1 %v1015_v20 }
 0x21d   : > { %v848_v11 = vadd.f32 %v2145_v9, %v847_v25  ;;  %v1655_v42 = vpop.f32.mrb[6].mxu1 }
 0x21e   : > { %v916_v23 = vmul.f32 %v856_v10, %v2068_v44  ;;  %v859_v14 = vadd.f32 %v1655_v42, %v2145_v9  ;;  %v850_v34 = vpop.f32.mrb[7].mxu1 }
 0x21f   : > { %v914_v31 = vmul.f32 %v848_v11, %v2048_v30  ;;  %v851_v2 = vadd.f32 %v2145_v9, %v850_v34 }
 0x220   : > { %v917_v53 = vmul.f32 %v859_v14, %v2077_v49 }
 0x221   : > { %v915_v58 = vmul.f32 %v851_v2, %v2056_v35 }
 0x222   : > { %v2250_v54 = vpack.c.bf16 %v917_v53, %v916_v23 }
 0x223   : > { %v2252_v56 = vpack.c.bf16 %v915_v58, %v914_v31 }
 0x224   : > { %v965_v47 = vunpack.c.h.bf16 %v2250_v54  ;;  %v964_v39 = vunpack.c.l.bf16 %v2250_v54 }
 0x225   : > { %v963_v44 = vunpack.c.h.bf16 %v2252_v56  ;;  %v962_v62 = vunpack.c.l.bf16 %v2252_v56 }
 0x226   : > { %v997_v0 = vsub.f32 %v917_v53, %v965_v47  ;;  %v996_v30 = vsub.f32 %v916_v23, %v964_v39 }
 0x227   : > { %v995_v63 = vsub.f32 %v915_v58, %v963_v44  ;;  %v994_v3 = vsub.f32 %v914_v31, %v962_v62 }
 0x228   : > { %v1017_v50 = vpack.c.bf16 %v997_v0, %v996_v30 }
 0x229   : > { %v1016_v49 = vpack.c.bf16 %v995_v63, %v994_v3 }
 0x22b   : > { %v1658_v5 = vpop.f32.mrb[8].mxu1  ;;  %1700 = vmatprep.mubr.bf16.mxu1 %v1016_v49 }
 0x22c   : > { %v872_v35 = vadd.f32 %v1658_v5, %v2145_v9  ;;  %v863_v45 = vpop.f32.mrb[9].mxu1  ;;  %1701 = vmatmul.mubr.bf16.gmra.mrb[36].mxu1 %v1017_v50 }
 0x22d   : > { %v864_v4 = vadd.f32 %v2145_v9, %v863_v45  ;;  %v1659_v59 = vpop.f32.mrb[10].mxu1 }
 0x22e   : > { %v920_v8 = vmul.f32 %v872_v35, %v2098_v13  ;;  %v875_v6 = vadd.f32 %v1659_v59, %v2145_v9  ;;  %v866_v16 = vpop.f32.mrb[11].mxu1 }
 0x22f   : > { %v918_v29 = vmul.f32 %v864_v4, %v2084_v61  ;;  %v867_v18 = vadd.f32 %v2145_v9, %v866_v16 }
 0x230   : > { %v921_v41 = vmul.f32 %v875_v6, %v2106_v19 }
 0x231   : > { %v919_v21 = vmul.f32 %v867_v18, %v2087_v1 }
 0x232   : > { %v939_v24 = vpack.c.bf16 %v921_v41, %v920_v8 }
 0x233   : > { %v938_v17 = vpack.c.bf16 %v919_v21, %v918_v29 }
 0x234   : > { %v969_v26 = vunpack.c.h.bf16 %v939_v24  ;;  %v968_v55 = vunpack.c.l.bf16 %v939_v24 }
 0x235   : > { %v967_v7 = vunpack.c.h.bf16 %v938_v17  ;;  %v966_v27 = vunpack.c.l.bf16 %v938_v17 }
 0x236   : > { %v1001_v28 = vsub.f32 %v921_v41, %v969_v26  ;;  %v1000_v20 = vsub.f32 %v920_v8, %v968_v55 }
 0x237   : > { %v999_v13 = vsub.f32 %v919_v21, %v967_v7  ;;  %v998_v22 = vsub.f32 %v918_v29, %v966_v27 }
 0x238   : > { %v1019_v37 = vpack.c.bf16 %v1001_v28, %v1000_v20 }
 0x239   : > { %v1018_v10 = vpack.c.bf16 %v999_v13, %v998_v22 }
 0x23b   : > { %v1662_v25 = vpop.f32.mrb[12].mxu1  ;;  %1704 = vmatprep.mubr.bf16.mxu1 %v1018_v10 }
 0x23c   : > { %v888_v61 = vadd.f32 %v1662_v25, %v2145_v9  ;;  %v879_v11 = vpop.f32.mrb[13].mxu1  ;;  %1705 = vmatmul.mubr.bf16.gmra.mrb[40].mxu1 %v1019_v37 }
 0x23d   : > { %v880_v1 = vadd.f32 %v2145_v9, %v879_v11  ;;  %v1663_v19 = vpop.f32.mrb[14].mxu1 }
 0x23e   : > { %v924_v42 = vmul.f32 %v888_v61, %v2134_v52  ;;  %v891_v23 = vadd.f32 %v1663_v19, %v2145_v9  ;;  %v882_v14 = vpop.f32.mrb[15].mxu1 }
 0x23f   : > { %v922_v34 = vmul.f32 %v880_v1, %v2119_v33  ;;  %v883_v31 = vadd.f32 %v2145_v9, %v882_v14 }
 0x240   : > { %v925_v2 = vmul.f32 %v891_v23, %v2137_v57 }
 0x241   : > { %v923_v53 = vmul.f32 %v883_v31, %v2127_v40 }
 0x242   : > { %v941_v58 = vpack.c.bf16 %v925_v2, %v924_v42 }
 0x243   : > { %v940_v47 = vpack.c.bf16 %v923_v53, %v922_v34 }
 0x244   : > { %v973_v39 = vunpack.c.h.bf16 %v941_v58  ;;  %v972_v44 = vunpack.c.l.bf16 %v941_v58 }
 0x245   : > { %v971_v62 = vunpack.c.h.bf16 %v940_v47  ;;  %v970_v0 = vunpack.c.l.bf16 %v940_v47 }
 0x246   : > { %v1005_v30 = vsub.f32 %v925_v2, %v973_v39  ;;  %v1004_v63 = vsub.f32 %v924_v42, %v972_v44 }
 0x247   : > { %v1003_v52 = vsub.f32 %v923_v53, %v971_v62  ;;  %v1002_v3 = vsub.f32 %v922_v34, %v970_v0 }
 0x248   : > { %v1021_v50 = vpack.c.bf16 %v1005_v30, %v1004_v63 }
 0x249   : > { %v1020_v49 = vpack.c.bf16 %v1003_v52, %v1002_v3 }
 0x24b   : > { %1708 = vmatprep.mubr.bf16.mxu1 %v1020_v49 }
 0x24c   : > { %1709 = vmatmul.mubr.bf16.gmra.mrb[44].mxu1 %v1021_v50 }
 0x24d   : > { %1728 = vmatprep.mubr.bf16.mxu1 %v2157_v46 }
 0x254   : > { %1729 = vmatmul.mubr.bf16.vlgmr.msra.gmra.mrb[16].mxu1 %v2155_v43 }
 0x255   : > { %1732 = vmatprep.mubr.bf16.mxu1 %v2177_v60 }
 0x25c   : > { %1733 = vmatmul.mubr.bf16.gmra.mrb[20].mxu1 %v2174_v36 }
 0x25d   : > { %1736 = vmatprep.mubr.bf16.mxu1 %v2201_v38 }
 0x264   : > { %1737 = vmatmul.mubr.bf16.gmra.mrb[24].mxu1 %v2198_v12 }
 0x265   : > { %1740 = vmatprep.mubr.bf16.mxu1 %v2220_v51 }
 0x26c   : > { %1741 = vmatmul.mubr.bf16.gmra.mrb[28].mxu1 %v2218_v48 }
 0x26d   : > { %1744 = vmatprep.mubr.bf16.mxu1 %v2236_v15 }
 0x274   : > { %1745 = vmatmul.mubr.bf16.gmra.mrb[32].mxu1 %v2234_v32 }
 0x275   : > { %1748 = vmatprep.mubr.bf16.mxu1 %v2252_v56 }
 0x27c   : > { %1749 = vmatmul.mubr.bf16.gmra.mrb[36].mxu1 %v2250_v54 }
 0x27d   : > { %1752 = vmatprep.mubr.bf16.mxu1 %v938_v17 }
 0x284   : > { %1753 = vmatmul.mubr.bf16.gmra.mrb[40].mxu1 %v939_v24 }
 0x285   : > { %1756 = vmatprep.mubr.bf16.mxu1 %v940_v47 }
 0x28c   : > { %1757 = vmatmul.mubr.bf16.gmra.mrb[44].mxu1 %v941_v58 }
 0x327   : > { %v1730_v33 = vpop.f32.mrb[16].mxu1 }
 0x328   : > { %1411 = vst.msk [vmem:[%s2291_s17 + $0x10] sm:$0xff] %vm1408_vm2, %v1730_v33  ;;  %v1281_v40 = vpop.f32.mrb[17].mxu1 }
 0x329   : > { %1409 = vst.msk [vmem:[%s2291_s17] sm:$0xff] %vm1408_vm2, %v1281_v40  ;;  %v1731_v57 = vpop.f32.mrb[18].mxu1 }
 0x32a   : > { %1412 = vst.msk [vmem:[%s2291_s17 + $0x18] sm:$0xff] %vm1408_vm2, %v1731_v57  ;;  %v1284_v9 = vpop.f32.mrb[19].mxu1 }
 0x32b   : > { %1410 = vst.msk [vmem:[%s2291_s17 + $0x8] sm:$0xff] %vm1408_vm2, %v1284_v9 }
 0x32f   : > { %v1734_v43 = vpop.f32.mrb[20].mxu1 }
 0x330   : > { %1415 = vst.msk [vmem:[%s2291_s17 + $0x30] sm:$0xff] %vm1408_vm2, %v1734_v43  ;;  %v1297_v46 = vpop.f32.mrb[21].mxu1 }
 0x331   : > { %1413 = vst.msk [vmem:[%s2291_s17 + $0x20] sm:$0xff] %vm1408_vm2, %v1297_v46  ;;  %v1735_v36 = vpop.f32.mrb[22].mxu1 }
 0x332   : > { %1416 = vst.msk [vmem:[%s2291_s17 + $0x38] sm:$0xff] %vm1408_vm2, %v1735_v36  ;;  %v1300_v60 = vpop.f32.mrb[23].mxu1 }
 0x333   : > { %1414 = vst.msk [vmem:[%s2291_s17 + $0x28] sm:$0xff] %vm1408_vm2, %v1300_v60 }
 0x337   : > { %v1738_v12 = vpop.f32.mrb[24].mxu1 }
 0x338   : > { %1419 = vst.msk [vmem:[%s2291_s17 + $0x50] sm:$0xff] %vm1408_vm2, %v1738_v12  ;;  %v1313_v38 = vpop.f32.mrb[25].mxu1 }
 0x339   : > { %1417 = vst.msk [vmem:[%s2291_s17 + $0x40] sm:$0xff] %vm1408_vm2, %v1313_v38  ;;  %v1739_v48 = vpop.f32.mrb[26].mxu1 }
 0x33a   : > { %1420 = vst.msk [vmem:[%s2291_s17 + $0x58] sm:$0xff] %vm1408_vm2, %v1739_v48  ;;  %v1316_v51 = vpop.f32.mrb[27].mxu1 }
 0x33b   : > { %1418 = vst.msk [vmem:[%s2291_s17 + $0x48] sm:$0xff] %vm1408_vm2, %v1316_v51 }
 0x33f   : > { %v1742_v32 = vpop.f32.mrb[28].mxu1 }
 0x340   : > { %1423 = vst.msk [vmem:[%s2291_s17 + $0x70] sm:$0xff] %vm1408_vm2, %v1742_v32  ;;  %v1329_v15 = vpop.f32.mrb[29].mxu1 }
 0x341   : > { %1421 = vst.msk [vmem:[%s2291_s17 + $0x60] sm:$0xff] %vm1408_vm2, %v1329_v15  ;;  %v1743_v54 = vpop.f32.mrb[30].mxu1 }
 0x342   : > { %1424 = vst.msk [vmem:[%s2291_s17 + $0x78] sm:$0xff] %vm1408_vm2, %v1743_v54  ;;  %v1332_v56 = vpop.f32.mrb[31].mxu1 }
 0x343   : > { %1422 = vst.msk [vmem:[%s2291_s17 + $0x68] sm:$0xff] %vm1408_vm2, %v1332_v56 }
 0x347   : > { %v1746_v5 = vpop.f32.mrb[32].mxu1 }
 0x348   : > { %1427 = vst.msk [vmem:[%s2291_s17 + $0x90] sm:$0xff] %vm1408_vm2, %v1746_v5  ;;  %v1345_v35 = vpop.f32.mrb[33].mxu1 }
 0x349   : > { %1425 = vst.msk [vmem:[%s2291_s17 + $0x80] sm:$0xff] %vm1408_vm2, %v1345_v35  ;;  %v1747_v45 = vpop.f32.mrb[34].mxu1 }
 0x34a   : > { %1428 = vst.msk [vmem:[%s2291_s17 + $0x98] sm:$0xff] %vm1408_vm2, %v1747_v45  ;;  %v1348_v4 = vpop.f32.mrb[35].mxu1 }
 0x34b   : > { %1426 = vst.msk [vmem:[%s2291_s17 + $0x88] sm:$0xff] %vm1408_vm2, %v1348_v4 }
 0x34f   : > { %v1750_v59 = vpop.f32.mrb[36].mxu1 }
 0x350   : > { %1431 = vst.msk [vmem:[%s2291_s17 + $0xb0] sm:$0xff] %vm1408_vm2, %v1750_v59  ;;  %v1361_v8 = vpop.f32.mrb[37].mxu1 }
 0x351   : > { %1429 = vst.msk [vmem:[%s2291_s17 + $0xa0] sm:$0xff] %vm1408_vm2, %v1361_v8  ;;  %v1751_v6 = vpop.f32.mrb[38].mxu1 }
 0x352   : > { %1432 = vst.msk [vmem:[%s2291_s17 + $0xb8] sm:$0xff] %vm1408_vm2, %v1751_v6  ;;  %v1364_v16 = vpop.f32.mrb[39].mxu1 }
 0x353   : > { %1430 = vst.msk [vmem:[%s2291_s17 + $0xa8] sm:$0xff] %vm1408_vm2, %v1364_v16 }
 0x357   : > { %v1754_v29 = vpop.f32.mrb[40].mxu1 }
 0x358   : > { %1435 = vst.msk [vmem:[%s2291_s17 + $0xd0] sm:$0xff] %vm1408_vm2, %v1754_v29  ;;  %v1377_v18 = vpop.f32.mrb[41].mxu1 }
 0x359   : > { %1433 = vst.msk [vmem:[%s2291_s17 + $0xc0] sm:$0xff] %vm1408_vm2, %v1377_v18  ;;  %v1755_v41 = vpop.f32.mrb[42].mxu1 }
 0x35a   : > { %1436 = vst.msk [vmem:[%s2291_s17 + $0xd8] sm:$0xff] %vm1408_vm2, %v1755_v41  ;;  %v1380_v21 = vpop.f32.mrb[43].mxu1 }
 0x35b   : > { %1434 = vst.msk [vmem:[%s2291_s17 + $0xc8] sm:$0xff] %vm1408_vm2, %v1380_v21 }
 0x35f   : > { %v1758_v24 = vpop.f32.mrb[44].mxu1 }
 0x360   : > { %1439 = vst.msk [vmem:[%s2291_s17 + $0xf0] sm:$0xff] %vm1408_vm2, %v1758_v24  ;;  %v1393_v17 = vpop.f32.mrb[45].mxu1 }
 0x361   : > { %1437 = vst.msk [vmem:[%s2291_s17 + $0xe0] sm:$0xff] %vm1408_vm2, %v1393_v17  ;;  %v1759_v26 = vpop.f32.mrb[46].mxu1 }
 0x362   : > { %1440 = vst.msk [vmem:[%s2291_s17 + $0xf8] sm:$0xff] %vm1408_vm2, %v1759_v26  ;;  %v1396_v55 = vpop.f32.mrb[47].mxu1 }
 0x363   : > { %1438 = vst.msk [vmem:[%s2291_s17 + $0xe8] sm:$0xff] %vm1408_vm2, %v1396_v55 }
 0x364 PF: > { %s16_s21 = sadd.s32 1, %s1830_s21  }
 0x365   : > { %p13_p4 = scmp.ge.s32.totalorder %s16_s21, 10  }
 0x367   :  { %15 = sbr.rel (!%p13_p4) target bundleno = 1 (0x1), region = 74 }

</bundles_post_ra>
